<compile_context>
chip_gen: v7x
topology: tpu7x:2x2x1
jax: 0.10.0
libtpu: 0.0.40
codegen_flags: <defaults>
</compile_context>

<pallas_src>
import functools

import jax
import jax.numpy as jnp
from jax import lax
from jax.experimental import pallas as pl
from jax.experimental.pallas import tpu as pltpu


def make_fused_kernel(Bt, H, W, C, k, dil):
  """Both stages of nonbt_dw, fused; one matmul per stage per grid step."""
  WC = W * C

  def place_window(stag, row0, col0, src, shift):
    """stag[row0+h, col0:col0+WC] = src[h+shift], zero where h+shift is OOB.

    Only the |shift| boundary rows are zeroed; everything else is overwritten.
    Column offsets col0 are multiples of 128 (lane-aligned writes).
    """
    if shift == 0:
      stag[pl.ds(row0, H), pl.ds(col0, WC)] = src
    elif shift > 0:
      n = H - shift
      stag[pl.ds(row0, n), pl.ds(col0, WC)] = src[shift:, :]
      stag[pl.ds(row0 + n, shift), pl.ds(col0, WC)] = jnp.zeros(
          (shift, WC), src.dtype)
    else:
      s = -shift
      n = H - s
      stag[pl.ds(row0, s), pl.ds(col0, WC)] = jnp.zeros((s, WC), src.dtype)
      stag[pl.ds(row0 + s, n), pl.ds(col0, WC)] = src[:n, :]

  def stage_windows(stag, srcs, dil_):
    """Lay the k H-shifted windows of each batch image into the staging buf."""
    p = ((k - 1) // 2) * dil_
    for bt in range(Bt):
      for kh in range(k):
        place_window(stag, bt * H, kh * WC, srcs[bt], kh * dil_ - p)

  def kernel(x_ref, m1_ref, b1_ref, m2_ref, b2_ref, out_ref, stag1, stag2):
    x = x_ref[...]                                   # (Bt, H, WC) lane-dense
    xs = [x[bt] for bt in range(Bt)]

    # -------- stage 1: dw(3x3, dil=1) + BN + pw(1x1) + BN + ReLU ------------
    # ONE (Bt*H, k*WC) @ (k*WC, WC) MXU matmul; taps/BNs/pw/W-pad folded in m1.
    stage_windows(stag1, xs, 1)
    m = jnp.dot(stag1[...], m1_ref[...], preferred_element_type=jnp.float32)
    # Default matmul precision met the 5e-4 check; left unpinned on purpose.
    m = jnp.maximum(m + b1_ref[...], 0.0)            # (Bt*H, WC)

    # -------- stage 2: dw(3x3, dil) + BN + pw(1x1) + BN (+residual, ReLU) ---
    ms = [m[bt * H:(bt + 1) * H, :] for bt in range(Bt)]
    stage_windows(stag2, ms, dil)
    acc = jnp.dot(stag2[...], m2_ref[...], preferred_element_type=jnp.float32)
    res = x.reshape(Bt * H, WC)
    out = jnp.maximum(acc + b2_ref[...] + res, 0.0)
    out_ref[...] = out.reshape(Bt, H, WC)            # single lane-dense store

  return kernel


def _fold_stage(w_dw, s_dw, b_dw, w_pw, s_pw, b_pw, *, W, C, k, dil):
  """Fold dw W-taps + BN1 + 1x1 pw-conv + BN2 into ONE (k*W*C, W*C) matrix.

  With A = diag(s_dw) @ w_pw @ diag(s_pw):
    M[kh*W*C + w'*C + c, w*C + j] =
        sum_kw [w' == w + kw*dil - p] * w_dw[kh, kw, c] * A[c, j]
  and bias b_eff = (b_dw @ w_pw) * s_pw + b_pw (tiled along W).
  The eye(W, k=...) selection also encodes the zero padding along W.
  """
  p = ((k - 1) // 2) * dil
  A = (s_dw[:, None] * w_pw) * s_pw[None, :]                 # (C, C)
  mats = []
  for kh in range(k):
    M = jnp.zeros((W * C, W * C), jnp.float32)
    for kw in range(k):
      shift = kw * dil - p                                   # source w' = w + shift
      sel = jnp.eye(W, k=-shift, dtype=jnp.float32)          # sel[w',w]=1 iff w'=w+shift
      M = M + jnp.kron(sel, w_dw[kh, kw][:, None] * A)
    mats.append(M)
  m_stack = jnp.concatenate(mats, axis=0).astype(jnp.float32)  # (k*W*C, W*C)
  b_eff = (b_dw @ w_pw) * s_pw + b_pw                          # (C,)
  b_row = jnp.tile(b_eff, W)[None, :].astype(jnp.float32)      # (1, W*C)
  return m_stack, b_row


def nonbt_dw_forward(x, params, *, k=3, dilation=1, batch_tile=None):
  """Pallas forward of nonbt_dw (eval-mode BN).  x: (B, H, W, C) float32 NHWC."""
  B, H, W, C = x.shape
  WC = W * C
  # Lane/sublane-dense layout assumption (unmasked vst, (8,128)-aligned tiles).
  assert H % 8 == 0 and WC % 128 == 0, (H, WC)

  if batch_tile is None:
    # Keep >= 2 grid steps when B >= 2 so v7x's two TensorCores both get work;
    # stack the remaining batch into the matmul M dimension.
    batch_tile = max(1, B // 2)
    if B % batch_tile != 0:
      batch_tile = 1
  assert B % batch_tile == 0, (B, batch_tile)
  Bt = batch_tile
  nsteps = B // Bt

  m1, b1 = _fold_stage(params["w1_dw"], params["s1_dw"], params["b1_dw"],
                       params["w1_pw"], params["s1_pw"], params["b1_pw"],
                       W=W, C=C, k=k, dil=1)
  m2, b2 = _fold_stage(params["w2_dw"], params["s2_dw"], params["b2_dw"],
                       params["w2_pw"], params["s2_pw"], params["b2_pw"],
                       W=W, C=C, k=k, dil=dilation)

  x_packed = x.reshape(B, H, WC)                  # lane-dense minor axis
  kernel = make_fused_kernel(Bt, H, W, C, k, dilation)

  out = pl.pallas_call(
      kernel,
      out_shape=jax.ShapeDtypeStruct((B, H, WC), jnp.float32),
      grid=(nsteps,),
      in_specs=[
          pl.BlockSpec((Bt, H, WC), lambda b: (b, 0, 0)),     # x (lane-dense)
          pl.BlockSpec((k * WC, WC), lambda b: (0, 0)),       # stage-1 K-stacked mat
          pl.BlockSpec((1, WC), lambda b: (0, 0)),            # stage-1 bias
          pl.BlockSpec((k * WC, WC), lambda b: (0, 0)),       # stage-2 K-stacked mat
          pl.BlockSpec((1, WC), lambda b: (0, 0)),            # stage-2 bias
      ],
      out_specs=pl.BlockSpec((Bt, H, WC), lambda b: (b, 0, 0)),
      scratch_shapes=[
          pltpu.VMEM((Bt * H, k * WC), jnp.float32),   # stage-1 staging windows
          pltpu.VMEM((Bt * H, k * WC), jnp.float32),   # stage-2 staging windows
      ],
      compiler_params=pltpu.CompilerParams(
          dimension_semantics=("parallel",)),
  )(x_packed, m1, b1, m2, b2)
  return out.reshape(B, H, W, C)


# ---------------- pure-JAX reference (for correctness check) ----------------
def reference_forward(x, params, *, k=3, dilation=1):
  p1 = (k - 1) // 2
  p2 = ((k - 1) // 2) * dilation
  C = x.shape[-1]

  def dwconv(t, w, pad, dil):  # w: (k, k, C)
    return lax.conv_general_dilated(
        t, w[:, :, None, :], (1, 1), ((pad, pad), (pad, pad)),
        rhs_dilation=(dil, dil),
        dimension_numbers=("NHWC", "HWIO", "NHWC"),
        feature_group_count=C, precision=lax.Precision.HIGHEST)

  def pwconv(t, w):            # w: (Cin, Cout)
    return lax.conv_general_dilated(
        t, w[None, None], (1, 1), "VALID",
        dimension_numbers=("NHWC", "HWIO", "NHWC"),
        precision=lax.Precision.HIGHEST)

  m = dwconv(x, params["w1_dw"], p1, 1) * params["s1_dw"] + params["b1_dw"]
  m = pwconv(m, params["w1_pw"]) * params["s1_pw"] + params["b1_pw"]
  m = jnp.maximum(m, 0.0)
  m = dwconv(m, params["w2_dw"], p2, dilation) * params["s2_dw"] + params["b2_dw"]
  m = pwconv(m, params["w2_pw"]) * params["s2_pw"] + params["b2_pw"]
  return jnp.maximum(m + x, 0.0)


# ---------------------------- parameter setup --------------------------------
def init_params(key, C, k=3, eps=1e-5):
  ks = iter(jax.random.split(key, 20))

  def bn_affine():
    gamma = jax.random.uniform(next(ks), (C,), minval=0.5, maxval=1.5)
    beta = 0.1 * jax.random.normal(next(ks), (C,))
    rmean = 0.1 * jax.random.normal(next(ks), (C,))
    rvar = jax.random.uniform(next(ks), (C,), minval=0.5, maxval=1.5)
    scale = gamma / jnp.sqrt(rvar + eps)
    shift = beta - rmean * scale
    return scale.astype(jnp.float32), shift.astype(jnp.float32)

  p = {}
  p["w1_dw"] = (0.2 * jax.random.normal(next(ks), (k, k, C))).astype(jnp.float32)
  p["s1_dw"], p["b1_dw"] = bn_affine()
  p["w1_pw"] = (0.2 * jax.random.normal(next(ks), (C, C))).astype(jnp.float32)
  p["s1_pw"], p["b1_pw"] = bn_affine()
  p["w2_dw"] = (0.2 * jax.random.normal(next(ks), (k, k, C))).astype(jnp.float32)
  p["s2_dw"], p["b2_dw"] = bn_affine()
  p["w2_pw"] = (0.2 * jax.random.normal(next(ks), (C, C))).astype(jnp.float32)
  p["s2_pw"], p["b2_pw"] = bn_affine()
  return p


if __name__ == "__main__":
  B, C, H, W = 2, 8, 16, 16        # NCHW-equivalent input: (2, 8, 16, 16)
  K, DILATION = 3, 2               # stride = 1 (residual add requires it)

  key = jax.random.PRNGKey(0)
  kx, kp = jax.random.split(key)
  x = jax.random.normal(kx, (B, H, W, C), dtype=jnp.float32)   # NHWC
  params = init_params(kp, C, k=K)

  fwd = jax.jit(functools.partial(nonbt_dw_forward, k=K, dilation=DILATION))
  out = jax.block_until_ready(fwd(x, params))

  ref = jax.block_until_ready(
      reference_forward(x, params, k=K, dilation=DILATION))

  assert out.shape == (B, H, W, C), out.shape
  max_err = float(jnp.max(jnp.abs(out - ref)))
  assert jnp.allclose(out, ref, atol=5e-4, rtol=5e-4), max_err
  print("KERNEL_OK")
</pallas_src>

<mosaic_0001>
module attributes {stable_mosaic.version = 11 : i64} {
  func.func @kernel(%arg0: i32, %arg1: memref<1x16x128xf32, #tpu.memory_space<vmem>>, %arg2: memref<384x128xf32, #tpu.memory_space<vmem>>, %arg3: memref<1x128xf32, #tpu.memory_space<vmem>>, %arg4: memref<384x128xf32, #tpu.memory_space<vmem>>, %arg5: memref<1x128xf32, #tpu.memory_space<vmem>>, %arg6: memref<1x16x128xf32, #tpu.memory_space<vmem>>, %arg7: memref<16x384xf32, #tpu.memory_space<vmem>>, %arg8: memref<16x384xf32, #tpu.memory_space<vmem>>) attributes {dimension_semantics = [#tpu.dimension_semantics<parallel>], iteration_bounds = array<i64: 2>, scalar_prefetch = 0 : i64, scratch_operands = 2 : i64, tpu.core_type = #tpu.core_type<tc>, window_params = [{transform_indices = @transform_0, window_bounds = array<i64: 1, 16, 128>}, {pipeline_mode = #tpu.pipeline_mode<synchronous>, transform_indices = @transform_1, window_bounds = array<i64: 384, 128>}, {pipeline_mode = #tpu.pipeline_mode<synchronous>, transform_indices = @transform_2, window_bounds = array<i64: 1, 128>}, {pipeline_mode = #tpu.pipeline_mode<synchronous>, transform_indices = @transform_3, window_bounds = array<i64: 384, 128>}, {pipeline_mode = #tpu.pipeline_mode<synchronous>, transform_indices = @transform_4, window_bounds = array<i64: 1, 128>}, {transform_indices = @transform_5, window_bounds = array<i64: 1, 16, 128>}]} {
    %c0 = arith.constant 0 : index
    %c0_0 = arith.constant 0 : index
    %c0_1 = arith.constant 0 : index
    %0 = vector.load %arg1[%c0, %c0_0, %c0_1] : memref<1x16x128xf32, #tpu.memory_space<vmem>>, vector<1x16x128xf32>
    %1 = vector.shape_cast %0 : vector<1x16x128xf32> to vector<16x128xf32>
    %cst = arith.constant 0.000000e+00 : f32
    %2 = vector.broadcast %cst : f32 to vector<1x128xf32>
    %c0_2 = arith.constant 0 : index
    %c0_3 = arith.constant 0 : index
    %3 = vector.load %arg7[%c0_2, %c0_3] : memref<16x384xf32, #tpu.memory_space<vmem>>, vector<1x128xf32>
    tpu.vector_store %arg7[%c0_2, %c0_3], %2 {strides = array<i32>} : memref<16x384xf32, #tpu.memory_space<vmem>>, vector<1x128xf32>,
    %4 = vector.extract_strided_slice %1 {offsets = [0, 0], sizes = [15, 128], strides = [1, 1]} : vector<16x128xf32> to vector<15x128xf32>
    %c1 = arith.constant 1 : index
    %c0_4 = arith.constant 0 : index
    %5 = vector.load %arg7[%c1, %c0_4] : memref<16x384xf32, #tpu.memory_space<vmem>>, vector<15x128xf32>
    tpu.vector_store %arg7[%c1, %c0_4], %4 {strides = array<i32>} : memref<16x384xf32, #tpu.memory_space<vmem>>, vector<15x128xf32>,
    %c0_5 = arith.constant 0 : index
    %c128 = arith.constant 128 : index
    %6 = vector.load %arg7[%c0_5, %c128] : memref<16x384xf32, #tpu.memory_space<vmem>>, vector<16x128xf32>
    tpu.vector_store %arg7[%c0_5, %c128], %1 {strides = array<i32>} : memref<16x384xf32, #tpu.memory_space<vmem>>, vector<16x128xf32>,
    %7 = vector.extract_strided_slice %1 {offsets = [1, 0], sizes = [15, 128], strides = [1, 1]} : vector<16x128xf32> to vector<15x128xf32>
    %c0_6 = arith.constant 0 : index
    %c256 = arith.constant 256 : index
    %8 = vector.load %arg7[%c0_6, %c256] : memref<16x384xf32, #tpu.memory_space<vmem>>, vector<15x128xf32>
    tpu.vector_store %arg7[%c0_6, %c256], %7 {strides = array<i32>} : memref<16x384xf32, #tpu.memory_space<vmem>>, vector<15x128xf32>,
    %cst_7 = arith.constant 0.000000e+00 : f32
    %9 = vector.broadcast %cst_7 : f32 to vector<1x128xf32>
    %c15 = arith.constant 15 : index
    %c256_8 = arith.constant 256 : index
    %10 = vector.load %arg7[%c15, %c256_8] : memref<16x384xf32, #tpu.memory_space<vmem>>, vector<1x128xf32>
    tpu.vector_store %arg7[%c15, %c256_8], %9 {strides = array<i32>} : memref<16x384xf32, #tpu.memory_space<vmem>>, vector<1x128xf32>,
    %c0_9 = arith.constant 0 : index
    %c0_10 = arith.constant 0 : index
    %11 = vector.load %arg7[%c0_9, %c0_10] : memref<16x384xf32, #tpu.memory_space<vmem>>, vector<16x384xf32>
    %c0_11 = arith.constant 0 : index
    %c0_12 = arith.constant 0 : index
    %12 = vector.load %arg2[%c0_11, %c0_12] : memref<384x128xf32, #tpu.memory_space<vmem>>, vector<384x128xf32>
    %cst_13 = arith.constant dense<0.000000e+00> : vector<16x128xf32>
    %13 = tpu.matmul %11, %12, %cst_13 {dimension_numbers = #tpu.dot_dimension_numbers<[1], [0], [0], [1], [0, 0, 1, 1], [], []>} : vector<16x384xf32>, vector<384x128xf32>, vector<16x128xf32> -> vector<16x128xf32>
    %c0_14 = arith.constant 0 : index
    %c0_15 = arith.constant 0 : index
    %14 = vector.load %arg3[%c0_14, %c0_15] : memref<1x128xf32, #tpu.memory_space<vmem>>, vector<1x128xf32>
    %15 = vector.broadcast %14 : vector<1x128xf32> to vector<16x128xf32>
    %16 = arith.addf %13, %15 : vector<16x128xf32>
    %cst_16 = arith.constant 0.000000e+00 : f32
    %17 = vector.broadcast %cst_16 : f32 to vector<16x128xf32>
    %18 = arith.maximumf %16, %17 : vector<16x128xf32>
    %cst_17 = arith.constant 0.000000e+00 : f32
    %19 = vector.broadcast %cst_17 : f32 to vector<2x128xf32>
    %c0_18 = arith.constant 0 : index
    %c0_19 = arith.constant 0 : index
    %20 = vector.load %arg8[%c0_18, %c0_19] : memref<16x384xf32, #tpu.memory_space<vmem>>, vector<2x128xf32>
    tpu.vector_store %arg8[%c0_18, %c0_19], %19 {strides = array<i32>} : memref<16x384xf32, #tpu.memory_space<vmem>>, vector<2x128xf32>,
    %21 = vector.extract_strided_slice %18 {offsets = [0, 0], sizes = [14, 128], strides = [1, 1]} : vector<16x128xf32> to vector<14x128xf32>
    %c2 = arith.constant 2 : index
    %c0_20 = arith.constant 0 : index
    %22 = vector.load %arg8[%c2, %c0_20] : memref<16x384xf32, #tpu.memory_space<vmem>>, vector<14x128xf32>
    tpu.vector_store %arg8[%c2, %c0_20], %21 {strides = array<i32>} : memref<16x384xf32, #tpu.memory_space<vmem>>, vector<14x128xf32>,
    %c0_21 = arith.constant 0 : index
    %c128_22 = arith.constant 128 : index
    %23 = vector.load %arg8[%c0_21, %c128_22] : memref<16x384xf32, #tpu.memory_space<vmem>>, vector<16x128xf32>
    tpu.vector_store %arg8[%c0_21, %c128_22], %18 {strides = array<i32>} : memref<16x384xf32, #tpu.memory_space<vmem>>, vector<16x128xf32>,
    %24 = vector.extract_strided_slice %18 {offsets = [2, 0], sizes = [14, 128], strides = [1, 1]} : vector<16x128xf32> to vector<14x128xf32>
    %c0_23 = arith.constant 0 : index
    %c256_24 = arith.constant 256 : index
    %25 = vector.load %arg8[%c0_23, %c256_24] : memref<16x384xf32, #tpu.memory_space<vmem>>, vector<14x128xf32>
    tpu.vector_store %arg8[%c0_23, %c256_24], %24 {strides = array<i32>} : memref<16x384xf32, #tpu.memory_space<vmem>>, vector<14x128xf32>,
    %cst_25 = arith.constant 0.000000e+00 : f32
    %26 = vector.broadcast %cst_25 : f32 to vector<2x128xf32>
    %c14 = arith.constant 14 : index
    %c256_26 = arith.constant 256 : index
    %27 = vector.load %arg8[%c14, %c256_26] : memref<16x384xf32, #tpu.memory_space<vmem>>, vector<2x128xf32>
    tpu.vector_store %arg8[%c14, %c256_26], %26 {strides = array<i32>} : memref<16x384xf32, #tpu.memory_space<vmem>>, vector<2x128xf32>,
    %c0_27 = arith.constant 0 : index
    %c0_28 = arith.constant 0 : index
    %28 = vector.load %arg8[%c0_27, %c0_28] : memref<16x384xf32, #tpu.memory_space<vmem>>, vector<16x384xf32>
    %c0_29 = arith.constant 0 : index
    %c0_30 = arith.constant 0 : index
    %29 = vector.load %arg4[%c0_29, %c0_30] : memref<384x128xf32, #tpu.memory_space<vmem>>, vector<384x128xf32>
    %cst_31 = arith.constant dense<0.000000e+00> : vector<16x128xf32>
    %30 = tpu.matmul %28, %29, %cst_31 {dimension_numbers = #tpu.dot_dimension_numbers<[1], [0], [0], [1], [0, 0, 1, 1], [], []>} : vector<16x384xf32>, vector<384x128xf32>, vector<16x128xf32> -> vector<16x128xf32>
    %31 = vector.shape_cast %0 : vector<1x16x128xf32> to vector<16x128xf32>
    %c0_32 = arith.constant 0 : index
    %c0_33 = arith.constant 0 : index
    %32 = vector.load %arg5[%c0_32, %c0_33] : memref<1x128xf32, #tpu.memory_space<vmem>>, vector<1x128xf32>
    %33 = vector.broadcast %32 : vector<1x128xf32> to vector<16x128xf32>
    %34 = arith.addf %30, %33 : vector<16x128xf32>
    %35 = arith.addf %34, %31 : vector<16x128xf32>
    %cst_34 = arith.constant 0.000000e+00 : f32
    %36 = vector.broadcast %cst_34 : f32 to vector<16x128xf32>
    %37 = arith.maximumf %35, %36 : vector<16x128xf32>
    %38 = vector.shape_cast %37 : vector<16x128xf32> to vector<1x16x128xf32>
    %c0_35 = arith.constant 0 : index
    %c0_36 = arith.constant 0 : index
    %c0_37 = arith.constant 0 : index
    %39 = vector.load %arg6[%c0_35, %c0_36, %c0_37] : memref<1x16x128xf32, #tpu.memory_space<vmem>>, vector<1x16x128xf32>
    tpu.vector_store %arg6[%c0_35, %c0_36, %c0_37], %38 {strides = array<i32>} : memref<1x16x128xf32, #tpu.memory_space<vmem>>, vector<1x16x128xf32>,
    return
  }
  func.func @transform_0(%arg0: i32) -> (i32, i32, i32) {
    %c0_i32 = arith.constant 0 : i32
    %c0_i32_0 = arith.constant 0 : i32
    %c0_i32_1 = arith.constant 0 : i32
    return %arg0, %c0_i32, %c0_i32_0 : i32, i32, i32
  }
  func.func @transform_1(%arg0: i32) -> (i32, i32) {
    %c0_i32 = arith.constant 0 : i32
    %c0_i32_0 = arith.constant 0 : i32
    %c0_i32_1 = arith.constant 0 : i32
    return %c0_i32, %c0_i32_0 : i32, i32
  }
  func.func @transform_2(%arg0: i32) -> (i32, i32) {
    %c0_i32 = arith.constant 0 : i32
    %c0_i32_0 = arith.constant 0 : i32
    %c0_i32_1 = arith.constant 0 : i32
    return %c0_i32, %c0_i32_0 : i32, i32
  }
  func.func @transform_3(%arg0: i32) -> (i32, i32) {
    %c0_i32 = arith.constant 0 : i32
    %c0_i32_0 = arith.constant 0 : i32
    %c0_i32_1 = arith.constant 0 : i32
    return %c0_i32, %c0_i32_0 : i32, i32
  }
  func.func @transform_4(%arg0: i32) -> (i32, i32) {
    %c0_i32 = arith.constant 0 : i32
    %c0_i32_0 = arith.constant 0 : i32
    %c0_i32_1 = arith.constant 0 : i32
    return %c0_i32, %c0_i32_0 : i32, i32
  }
  func.func @transform_5(%arg0: i32) -> (i32, i32, i32) {
    %c0_i32 = arith.constant 0 : i32
    %c0_i32_0 = arith.constant 0 : i32
    %c0_i32_1 = arith.constant 0 : i32
    return %arg0, %c0_i32, %c0_i32_0 : i32, i32, i32
  }
}

</mosaic_0001>

<bundles_post_ra>
// kernel: tile.13
= control target key start
LH: loop header
LB: loop body
LE: loop exit
PB: predicated region body
PF: predicated region fallthrough
CT: control target
= control target key end

     0   :  { %s28_s0 = inlined_call_operand.vmem [shape: f32[8], index: 0, kind: input, shape index: {}]   ;;  %s29_s1 = inlined_call_operand.vmem [shape: f32[16,8], index: 1, kind: output, shape index: {}]  }
   0x1   :  { %v4_v0 = vld [vmem:[%s28_s0] ss:$0 sm:$0xff] }
   0x2   :  { %5 = vst [vmem:[%s29_s1] sm:$0xff] %v4_v0  ;;  %8 = vst [vmem:[%s29_s1 + $0x8] sm:$0xff] %v4_v0 }

// kernel: tile.14
= control target key start
LH: loop header
LB: loop body
LE: loop exit
PB: predicated region body
PF: predicated region fallthrough
CT: control target
= control target key end

     0   :  { %s131_s10 = smov 120   ;;  %s132_s11 = smov 104   ;;  %vm3_vm0 = vcmask 64512   ;;  %vm9_vm1 = vcmask 1048512   ;;  %vm15_vm2 = vcmask 982912   ;;  %vm21_vm3 = vcmask 917312   ;;  %s207_s0 = inlined_call_operand.vmem [shape: f32[16,8], index: 0, kind: input, shape index: {}]   ;;  %s208_s1 = inlined_call_operand.vmem [shape: f32[1,128], index: 1, kind: output, shape index: {}]  }
   0x1   :  { %v101_v0 = vld [vmem:[%s207_s0 + $0xf] sm:$0x1]   ;;  %v103_v1 = vld [vmem:[%s207_s0 + $0xd] sm:$0x1]   ;;  %v102_v2 = vld [vmem:[%s207_s0 + $0xe] sm:$0x1]  }
   0x2   :  { %7 = vrot.lane.b32.xlu0 %v101_v0, %s131_s10  ;;  %19 = vrot.lane.b32.xlu1 %v103_v1, %s132_s11  ;;  %v104_v3 = vld [vmem:[%s207_s0 + $0xc] sm:$0x1]   ;;  %s133_s16 = smov 112   ;;  %s134_s17 = smov 96   ;;  %v105_v4 = vld [vmem:[%s207_s0 + $0xb] sm:$0x1]  }
   0x3   :  { %v106_v5 = vld [vmem:[%s207_s0 + $0xa] sm:$0x1]   ;;  %v2_v6 = vld [vmem:[%s207_s0] sm:$0x1]   ;;  %s135_s24 = smov 88   ;;  %s136_s25 = smov 80  }
   0x4   :  { %4 = vst.msk [vmem:[#allocation0] sm:$0x1] %vm3_vm0, %v2_v6   ;;  %v107_v7 = vld [vmem:[%s207_s0 + $0x9] sm:$0x1]   ;;  %v108_v8 = vld [vmem:[%s207_s0 + $0x8] sm:$0x1]  }
   0x5   :  { %s137_s30 = smov 72   ;;  %s138_s2 = smov 64   ;;  %v109_v9 = vld [vmem:[%s207_s0 + $0x7] sm:$0x1]   ;;  %v110_v10 = vld [vmem:[%s207_s0 + $0x6] sm:$0x1]  }
   0x6   :  { %13 = vrot.lane.b32.xlu0 %v102_v2, %s133_s16  ;;  %25 = vrot.lane.b32.xlu1 %v104_v3, %s134_s17  ;;  %s139_s7 = smov 56   ;;  %s140_s8 = smov 48   ;;  %v111_v11 = vld [vmem:[%s207_s0 + $0x5] sm:$0x1]   ;;  %v112_v12 = vld [vmem:[%s207_s0 + $0x4] sm:$0x1]  }
   0x7   :  { %s141_s13 = smov 40   ;;  %s142_s14 = smov 32   ;;  %v113_v13 = vld [vmem:[%s207_s0 + $0x3] sm:$0x1]   ;;  %v114_v14 = vld [vmem:[%s207_s0 + $0x2] sm:$0x1]  }
   0x8   :  { %s143_s19 = smov 24   ;;  %s144_s20 = smov 16   ;;  %v115_v15 = vld [vmem:[%s207_s0 + $0x1] sm:$0x1]   ;;  %vm27_vm4 = vcmask 851712   ;;  %vm33_vm5 = vcmask 786112  }
   0x9   :  { %s145_s0 = smov 8   ;;  %vm39_vm6 = vcmask 720512   ;;  %vm45_vm7 = vcmask 654912   ;;  %vm51_vm8 = vcmask 589312   ;;  %vm57_vm9 = vcmask 523712  }
   0xa   :  { %31 = vrot.lane.b32.xlu0 %v105_v4, %s135_s24  ;;  %37 = vrot.lane.b32.xlu1 %v106_v5, %s136_s25  ;;  %vm63_vm10 = vcmask 458112   ;;  %vm69_vm11 = vcmask 392512   ;;  %vm75_vm12 = vcmask 326912   ;;  %vm81_vm13 = vcmask 261312  }
   0xb   :  { %vm87_vm14 = vcmask 195712   ;;  %vm93_vm15 = vcmask 130112  }
   0xe   :  { %43 = vrot.lane.b32.xlu0 %v107_v7, %s137_s30  ;;  %49 = vrot.lane.b32.xlu1 %v108_v8, %s138_s2 }
  0x12   :  { %55 = vrot.lane.b32.xlu0 %v109_v9, %s139_s7  ;;  %61 = vrot.lane.b32.xlu1 %v110_v10, %s140_s8 }
  0x16   :  { %67 = vrot.lane.b32.xlu0 %v111_v11, %s141_s13  ;;  %73 = vrot.lane.b32.xlu1 %v112_v12, %s142_s14 }
  0x1a   :  { %79 = vrot.lane.b32.xlu0 %v113_v13, %s143_s19  ;;  %85 = vrot.lane.b32.xlu1 %v114_v14, %s144_s20 }
  0x1e   :  { %91 = vrot.lane.b32.xlu0 %v115_v15, %s145_s0 }
  0x74   :  { %v8_v16 = vpop.permute.xlu0 %7   ;;  %v20_v17 = vpop.permute.xlu1 %19  }
  0x75   :  { %10 = vst.msk [vmem:[#allocation0] sm:$0x1] %vm9_vm1, %v8_v16  }
  0x78   :  { %v14_v18 = vpop.permute.xlu0 %13   ;;  %v26_v19 = vpop.permute.xlu1 %25  }
  0x79   :  { %16 = vst.msk [vmem:[#allocation0] sm:$0x1] %vm15_vm2, %v14_v18  }
  0x7a   :  { %22 = vst.msk [vmem:[#allocation0] sm:$0x1] %vm21_vm3, %v20_v17  }
  0x7b   :  { %28 = vst.msk [vmem:[#allocation0] sm:$0x1] %vm27_vm4, %v26_v19  }
  0x7c   :  { %v32_v20 = vpop.permute.xlu0 %31   ;;  %v38_v21 = vpop.permute.xlu1 %37  }
  0x7d   :  { %34 = vst.msk [vmem:[#allocation0] sm:$0x1] %vm33_vm5, %v32_v20  }
  0x7e   :  { %40 = vst.msk [vmem:[#allocation0] sm:$0x1] %vm39_vm6, %v38_v21  }
  0x80   :  { %v44_v22 = vpop.permute.xlu0 %43   ;;  %v50_v23 = vpop.permute.xlu1 %49  }
  0x81   :  { %46 = vst.msk [vmem:[#allocation0] sm:$0x1] %vm45_vm7, %v44_v22  }
  0x82   :  { %52 = vst.msk [vmem:[#allocation0] sm:$0x1] %vm51_vm8, %v50_v23  }
  0x84   :  { %v56_v24 = vpop.permute.xlu0 %55   ;;  %v62_v25 = vpop.permute.xlu1 %61  }
  0x85   :  { %58 = vst.msk [vmem:[#allocation0] sm:$0x1] %vm57_vm9, %v56_v24  }
  0x86   :  { %64 = vst.msk [vmem:[#allocation0] sm:$0x1] %vm63_vm10, %v62_v25  }
  0x88   :  { %v68_v26 = vpop.permute.xlu0 %67   ;;  %v74_v27 = vpop.permute.xlu1 %73  }
  0x89   :  { %70 = vst.msk [vmem:[#allocation0] sm:$0x1] %vm69_vm11, %v68_v26  }
  0x8a   :  { %76 = vst.msk [vmem:[#allocation0] sm:$0x1] %vm75_vm12, %v74_v27  }
  0x8c   :  { %v80_v28 = vpop.permute.xlu0 %79   ;;  %v86_v29 = vpop.permute.xlu1 %85  }
  0x8d   :  { %82 = vst.msk [vmem:[#allocation0] sm:$0x1] %vm81_vm13, %v80_v28  }
  0x8e   :  { %88 = vst.msk [vmem:[#allocation0] sm:$0x1] %vm87_vm14, %v86_v29  }
  0x90   :  { %v92_v30 = vpop.permute.xlu0 %91  }
  0x91   :  { %94 = vst.msk [vmem:[#allocation0] sm:$0x1] %vm93_vm15, %v92_v30  }
  0x98   :  { %v98_v31 = vld [vmem:[#allocation0] sm:$0x1] }
  0x99   :  { %100 = vst [vmem:[%s208_s1] sm:$0x1] %v98_v31 }

// kernel: nonbt_dw_forward.1
= control target key start
LH: loop header
LB: loop body
LE: loop exit
PB: predicated region body
PF: predicated region fallthrough
CT: control target
= control target key end

     0   :  { %s1129_s18 = smov 0   ;;  %s1473_s0 = inlined_call_operand.vmem [shape: f32[2,16,128], index: 0, kind: input, shape index: {}]   ;;  %s1474_s1 = inlined_call_operand.vmem [shape: f32[384,128], index: 1, kind: input, shape index: {}]   ;;  %s1475_s2 = inlined_call_operand.vmem [shape: f32[1,128], index: 2, kind: input, shape index: {}]   ;;  %s1476_s3 = inlined_call_operand.vmem [shape: f32[384,128], index: 3, kind: input, shape index: {}]   ;;  %s1477_s4 = inlined_call_operand.vmem [shape: f32[1,128], index: 4, kind: input, shape index: {}]   ;;  %s1478_s5 = inlined_call_operand.vmem [shape: f32[2,16,128], index: 5, kind: output, shape index: {}]  }
   0x1 LB: > { %s756_s19 = sadd.s32 4294967295, %s1096_s18   ;;  %p760_p0 = scmp.ge.s32.totalorder %s1096_s18, 1  ;;  %s1096_s18 = sphi %s1129_s18, %s15_s18  }
   0x2   : > { %p187_p1 = scmp.lt.s32.totalorder %s1096_s18, 3 }
   0x4   : > { %p188_p2 = pnand %p760_p0, %p187_p1 }
   0x5   : > { %v271_v0 = vld [vmem:[%s1474_s1 + $0x80] sm:$0xff] (!%p188_p2)  ;;  %v272_v1 = vld [vmem:[%s1474_s1 + $0x88] sm:$0xff] (!%p188_p2)  ;;  %v273_v5 = vld [vmem:[%s1474_s1 + $0x90] sm:$0xff] (!%p188_p2)  ;;  %p1157_p3 = scmp.lt.s32.totalorder (!%p188_p2), %s756_s19, 1  ;;  %v1098_v7 = vmov (!%p188_p2), 0.0   ;;  %vm240_vm0 = vcmask (!%p188_p2), 1046528  }
   0x6   : > { %191 = sbr.rel (%p188_p2) target bundleno = 499 (0x1f3), region = 40  ;;  %v255_v2 = vld [vmem:[%s1474_s1] sm:$0xff] (!%p188_p2)  ;;  %v953_v3 = vpack.c.bf16 (!%p188_p2), %v272_v1, %v271_v0  ;;  %v256_v4 = vld [vmem:[%s1474_s1 + $0x8] sm:$0xff] (!%p188_p2)  ;;  %v274_v6 = vld [vmem:[%s1474_s1 + $0x98] sm:$0xff] (!%p188_p2)  ;;  %227 = vst [vmem:[#allocation2] sm:$0x1] (!%p188_p2), %v1098_v7 }
   0x7   : > { %248 = vst [vmem:[#allocation2 + $0x2f] sm:$0x1] (!%p188_p2), %v1098_v7  ;;  %462 = vst [vmem:[#allocation3] sm:$0x3] (!%p188_p2), %v1098_v7  ;;  %v955_v8 = vpack.c.bf16 (!%p188_p2), %v256_v4, %v255_v2  ;;  %v957_v9 = vpack.c.bf16 (!%p188_p2), %v274_v6, %v273_v5  ;;  %v287_v10 = vld [vmem:[%s1474_s1 + $0x100] sm:$0xff] (!%p188_p2)  ;;  %v288_v11 = vld [vmem:[%s1474_s1 + $0x108] sm:$0xff] (!%p188_p2) }
   0x8   : > { %483 = vst [vmem:[#allocation3 + $0x28] sm:$0xc0] (!%p188_p2), %v1098_v7  ;;  %v257_v12 = vld [vmem:[%s1474_s1 + $0x10] sm:$0xff] (!%p188_p2)  ;;  %954 = vmatprep.subr.bf16.mxu0 (!%p188_p2), %v953_v3  ;;  %v985_v13 = vpack.c.bf16 (!%p188_p2), %v288_v11, %v287_v10  ;;  %v258_v14 = vld [vmem:[%s1474_s1 + $0x18] sm:$0xff] (!%p188_p2)  ;;  %v275_v15 = vld [vmem:[%s1474_s1 + $0xa0] sm:$0xff] (!%p188_p2)  ;;  %vm230_vm1 = vcmask (!%p188_p2), 1040384  }
   0x9   : > { %v276_v16 = vld [vmem:[%s1474_s1 + $0xa8] sm:$0xff] (!%p188_p2)  ;;  %956 = vmatpush3.bf16.msra.mxu0 (!%p188_p2), %v955_v8  ;;  %v959_v17 = vpack.c.bf16 (!%p188_p2), %v258_v14, %v257_v12  ;;  %v289_v18 = vld [vmem:[%s1474_s1 + $0x110] sm:$0xff] (!%p188_p2)  ;;  %v290_v19 = vld [vmem:[%s1474_s1 + $0x118] sm:$0xff] (!%p188_p2)  ;;  %vm465_vm2 = vcmask (!%p188_p2), 1041408   ;;  %vm475_vm3 = vcmask (!%p188_p2), 1045504  }
   0xa   : > { %958 = vmatprep.subr.bf16.mxu0 (!%p188_p2), %v957_v9  ;;  %986 = vmatprep.subr.bf16.mxu1 (!%p188_p2), %v985_v13  ;;  %v961_v20 = vpack.c.bf16 (!%p188_p2), %v276_v16, %v275_v15  ;;  %v989_v21 = vpack.c.bf16 (!%p188_p2), %v290_v19, %v289_v18  ;;  %v259_v22 = vld [vmem:[%s1474_s1 + $0x20] sm:$0xff] (!%p188_p2)  ;;  %v260_v23 = vld [vmem:[%s1474_s1 + $0x28] sm:$0xff] (!%p188_p2)  ;;  %v277_v24 = vld [vmem:[%s1474_s1 + $0xb0] sm:$0xff] (!%p188_p2) }
   0xb   : > { %988 = vmatpush3.bf16.msra.mxu1 (!%p188_p2), %v985_v13  ;;  %v278_v25 = vld [vmem:[%s1474_s1 + $0xb8] sm:$0xff] (!%p188_p2)  ;;  %v291_v26 = vld [vmem:[%s1474_s1 + $0x120] sm:$0xff] (!%p188_p2)  ;;  %v292_v27 = vld [vmem:[%s1474_s1 + $0x128] sm:$0xff] (!%p188_p2)  ;;  %v963_v29 = vpack.c.bf16 (!%p188_p2), %v260_v23, %v259_v22 }
   0xc   : > { %990 = vmatprep.subr.bf16.mxu1 (!%p188_p2), %v989_v21  ;;  %v993_v28 = vpack.c.bf16 (!%p188_p2), %v292_v27, %v291_v26  ;;  %v293_v30 = vld [vmem:[%s1474_s1 + $0x130] sm:$0xff] (!%p188_p2)  ;;  %v294_v31 = vld [vmem:[%s1474_s1 + $0x138] sm:$0xff] (!%p188_p2)  ;;  %v965_v32 = vpack.c.bf16 (!%p188_p2), %v278_v25, %v277_v24  ;;  %v279_v35 = vld [vmem:[%s1474_s1 + $0xc0] sm:$0xff] (!%p188_p2) }
   0xd   : > { %s1481_s19 = smov (!%p1157_p3, %s756_s19), 1  ;;  %960 = vmatpush3.bf16.msra.mxu0 %v959_v17  ;;  %v261_v33 = vld [vmem:[%s1474_s1 + $0x30] sm:$0xff]  ;;  %v262_v34 = vld [vmem:[%s1474_s1 + $0x38] sm:$0xff]  ;;  %v280_v36 = vld [vmem:[%s1474_s1 + $0xc8] sm:$0xff]  ;;  %v997_v37 = vpack.c.bf16 %v294_v31, %v293_v30 }
   0xe   : > { %962 = vmatprep.subr.bf16.mxu0 %v961_v20  ;;  %s769_s23 = sshll.u32 %s1481_s19, 4  ;;  %v967_v38 = vpack.c.bf16 %v262_v34, %v261_v33  ;;  %v295_v39 = vld [vmem:[%s1474_s1 + $0x140] sm:$0xff]  ;;  %v296_v40 = vld [vmem:[%s1474_s1 + $0x148] sm:$0xff]  ;;  %v969_v41 = vpack.c.bf16 %v280_v36, %v279_v35  ;;  %v281_v44 = vld [vmem:[%s1474_s1 + $0xd0] sm:$0xff] }
   0xf   : > { %992 = vmatpush3.bf16.msra.mxu1 %v989_v21  ;;  %s219_s10 = scalar_lea.vmem %s1473_s0, %s769_s23  ;;  %v263_v42 = vld [vmem:[%s1474_s1 + $0x40] sm:$0xff]  ;;  %v264_v43 = vld [vmem:[%s1474_s1 + $0x48] sm:$0xff]  ;;  %v282_v45 = vld [vmem:[%s1474_s1 + $0xd8] sm:$0xff]  ;;  %v1001_v46 = vpack.c.bf16 %v296_v40, %v295_v39  ;;  %s224_s22 = scalar_lea.vmem %s1478_s5, %s769_s23 }
  0x10   : > { %994 = vmatprep.subr.bf16.mxu1 %v993_v28  ;;  %v1251_v47 = vld [vmem:[%s219_s10] sm:$0xff]  ;;  %v971_v48 = vpack.c.bf16 %v264_v43, %v263_v42  ;;  %v297_v49 = vld [vmem:[%s1474_s1 + $0x150] sm:$0xff]  ;;  %v298_v50 = vld [vmem:[%s1474_s1 + $0x158] sm:$0xff]  ;;  %v973_v54 = vpack.c.bf16 %v282_v45, %v281_v44 }
  0x11   : > { %964 = vmatpush3.bf16.msra.mxu0 %v963_v29  ;;  %374 = vmatprep.mubr.f32.mxu0 %v1251_v47  ;;  %v231_v51 = vrot.slane %v1251_v47, 7  ;;  %v1261_v52 = vld [vmem:[%s219_s10 + $0x8] sm:$0xff]  ;;  %v241_v53 = vrot.slane %v1251_v47, 1  ;;  %v265_v55 = vld [vmem:[%s1474_s1 + $0x50] sm:$0xff]  ;;  %v266_v56 = vld [vmem:[%s1474_s1 + $0x58] sm:$0xff]  ;;  %v1005_v61 = vpack.c.bf16 %v298_v50, %v297_v49 }
  0x12   : > { %966 = vmatprep.subr.bf16.mxu0 %v965_v32  ;;  %v242_v57 = vrot.slane %v1261_v52, 1  ;;  %v232_v58 = vrot.slane %v1261_v52, 7  ;;  %v283_v59 = vld [vmem:[%s1474_s1 + $0xe0] sm:$0xff]  ;;  %v284_v60 = vld [vmem:[%s1474_s1 + $0xe8] sm:$0xff]  ;;  %v975_v0 = vpack.c.bf16 %v266_v56, %v265_v55  ;;  %v285_v6 = vld [vmem:[%s1474_s1 + $0xf0] sm:$0xff] }
  0x13   : > { %996 = vmatpush3.bf16.msra.mxu1 %v993_v28  ;;  %236 = vst [vmem:[#allocation2] sm:$0xfe] %v231_v51  ;;  %v299_v1 = vld [vmem:[%s1474_s1 + $0x160] sm:$0xff]  ;;  %v300_v2 = vld [vmem:[%s1474_s1 + $0x168] sm:$0xff]  ;;  %v977_v3 = vpack.c.bf16 %v284_v60, %v283_v59  ;;  %v286_v7 = vld [vmem:[%s1474_s1 + $0xf8] sm:$0xff] }
  0x14   : > { %998 = vmatprep.subr.bf16.mxu1 %v997_v37  ;;  %v243_v62 = vsel %vm240_vm0, %v241_v53, %v242_v57  ;;  %247 = vst [vmem:[#allocation2 + $0x28] sm:$0x7f] %v242_v57  ;;  %v1279_v63 = vsel %vm230_vm1, %v231_v51, %v232_v58  ;;  %v267_v4 = vld [vmem:[%s1474_s1 + $0x60] sm:$0xff]  ;;  %v268_v5 = vld [vmem:[%s1474_s1 + $0x68] sm:$0xff]  ;;  %v1009_v8 = vpack.c.bf16 %v300_v2, %v299_v1  ;;  %v301_v10 = vld [vmem:[%s1474_s1 + $0x170] sm:$0xff] }
  0x15   : > { %968 = vmatpush3.bf16.msra.mxu0 %v967_v38  ;;  %915 = vmatprep.mubr.f32.mxu1 %v243_v62  ;;  %v979_v9 = vpack.c.bf16 %v268_v5, %v267_v4  ;;  %v302_v11 = vld [vmem:[%s1474_s1 + $0x178] sm:$0xff]  ;;  %v981_v12 = vpack.c.bf16 %v286_v7, %v285_v6  ;;  %v269_v13 = vld [vmem:[%s1474_s1 + $0x70] sm:$0xff]  ;;  %v506_v15 = vld [vmem:[%s1476_s3 + $0x80] sm:$0xff] }
  0x16   : > { %970 = vmatprep.subr.bf16.mxu0 %v969_v41  ;;  %v270_v14 = vld [vmem:[%s1474_s1 + $0x78] sm:$0xff]  ;;  %v507_v16 = vld [vmem:[%s1476_s3 + $0x88] sm:$0xff]  ;;  %v1013_v17 = vpack.c.bf16 %v302_v11, %v301_v10  ;;  %v522_v19 = vld [vmem:[%s1476_s3 + $0x100] sm:$0xff] }
  0x17   : > { %1000 = vmatpush3.bf16.msra.mxu1 %v997_v37  ;;  %v983_v18 = vpack.c.bf16 %v270_v14, %v269_v13  ;;  %v523_v20 = vld [vmem:[%s1476_s3 + $0x108] sm:$0xff]  ;;  %v1017_v21 = vpack.c.bf16 %v507_v16, %v506_v15  ;;  %v490_v22 = vld [vmem:[%s1476_s3] sm:$0xff]  ;;  %v508_v24 = vld [vmem:[%s1476_s3 + $0x90] sm:$0xff] }
  0x18   : > { %1002 = vmatprep.subr.bf16.mxu1 %v1001_v46  ;;  %v491_v23 = vld [vmem:[%s1476_s3 + $0x8] sm:$0xff]  ;;  %v509_v25 = vld [vmem:[%s1476_s3 + $0x98] sm:$0xff]  ;;  %v1049_v26 = vpack.c.bf16 %v523_v20, %v522_v19  ;;  %v524_v29 = vld [vmem:[%s1476_s3 + $0x110] sm:$0xff] }
  0x19   : > { %972 = vmatpush3.bf16.msra.mxu0 %v971_v48  ;;  %v1019_v28 = vpack.c.bf16 %v491_v23, %v490_v22  ;;  %v525_v30 = vld [vmem:[%s1476_s3 + $0x118] sm:$0xff]  ;;  %v1021_v31 = vpack.c.bf16 %v509_v25, %v508_v24  ;;  %v492_v32 = vld [vmem:[%s1476_s3 + $0x10] sm:$0xff]  ;;  %v510_v35 = vld [vmem:[%s1476_s3 + $0xa0] sm:$0xff] }
  0x1a   : > { %974 = vmatprep.subr.bf16.mxu0 %v973_v54  ;;  %v249_v27 = vld [vmem:[#allocation2] sm:$0xff]  ;;  %v493_v33 = vld [vmem:[%s1476_s3 + $0x18] sm:$0xff]  ;;  %v511_v36 = vld [vmem:[%s1476_s3 + $0xa8] sm:$0xff]  ;;  %v1053_v37 = vpack.c.bf16 %v525_v30, %v524_v29 }
  0x1b   : > { %1004 = vmatpush3.bf16.msra.mxu1 %v1001_v46  ;;  %v254_v34 = vld [vmem:[#allocation2 + $0x28] sm:$0xff]  ;;  %v1023_v38 = vpack.c.bf16 %v493_v33, %v492_v32  ;;  %v1025_v39 = vpack.c.bf16 %v511_v36, %v510_v35  ;;  %v494_v40 = vld [vmem:[%s1476_s3 + $0x20] sm:$0xff]  ;;  %v512_v43 = vld [vmem:[%s1476_s3 + $0xb0] sm:$0xff] }
  0x1c   : > { %1006 = vmatprep.subr.bf16.mxu1 %v1005_v61  ;;  %v495_v41 = vld [vmem:[%s1476_s3 + $0x28] sm:$0xff]  ;;  %v513_v44 = vld [vmem:[%s1476_s3 + $0xb8] sm:$0xff]  ;;  %v526_v45 = vld [vmem:[%s1476_s3 + $0x120] sm:$0xff] }
  0x1d   : > { %976 = vmatpush3.bf16.msra.mxu0 %v975_v0  ;;  %v1027_v42 = vpack.c.bf16 %v495_v41, %v494_v40  ;;  %v1029_v46 = vpack.c.bf16 %v513_v44, %v512_v43  ;;  %v496_v48 = vld [vmem:[%s1476_s3 + $0x30] sm:$0xff]  ;;  %v497_v49 = vld [vmem:[%s1476_s3 + $0x38] sm:$0xff]  ;;  %v527_v50 = vld [vmem:[%s1476_s3 + $0x128] sm:$0xff] }
  0x1e   : > { %978 = vmatprep.subr.bf16.mxu0 %v977_v3  ;;  %v1031_v51 = vpack.c.bf16 %v497_v49, %v496_v48  ;;  %v1057_v53 = vpack.c.bf16 %v527_v50, %v526_v45  ;;  %v514_v54 = vld [vmem:[%s1476_s3 + $0xc0] sm:$0xff]  ;;  %v515_v55 = vld [vmem:[%s1476_s3 + $0xc8] sm:$0xff]  ;;  %v528_v56 = vld [vmem:[%s1476_s3 + $0x130] sm:$0xff] }
  0x1f   : > { %1008 = vmatpush3.bf16.msra.mxu1 %v1005_v61  ;;  %v1033_v57 = vpack.c.bf16 %v515_v55, %v514_v54  ;;  %v498_v58 = vld [vmem:[%s1476_s3 + $0x40] sm:$0xff]  ;;  %v499_v59 = vld [vmem:[%s1476_s3 + $0x48] sm:$0xff]  ;;  %v529_v60 = vld [vmem:[%s1476_s3 + $0x138] sm:$0xff] }
  0x20   : > { %1010 = vmatprep.subr.bf16.mxu1 %v1009_v8  ;;  %v1035_v61 = vpack.c.bf16 %v499_v59, %v498_v58  ;;  %v1061_v62 = vpack.c.bf16 %v529_v60, %v528_v56  ;;  %v517_v0 = vld [vmem:[%s1476_s3 + $0xd8] sm:$0xff]  ;;  %v530_v1 = vld [vmem:[%s1476_s3 + $0x140] sm:$0xff]  ;;  %v500_v3 = vld [vmem:[%s1476_s3 + $0x50] sm:$0xff] }
  0x21   : > { %980 = vmatpush3.bf16.msra.mxu0 %v979_v9  ;;  %v501_v4 = vld [vmem:[%s1476_s3 + $0x58] sm:$0xff]  ;;  %v531_v5 = vld [vmem:[%s1476_s3 + $0x148] sm:$0xff]  ;;  %v532_v10 = vld [vmem:[%s1476_s3 + $0x150] sm:$0xff] }
  0x22   : > { %982 = vmatprep.subr.bf16.mxu0 %v981_v12  ;;  %v1039_v6 = vpack.c.bf16 %v501_v4, %v500_v3  ;;  %v1065_v7 = vpack.c.bf16 %v531_v5, %v530_v1  ;;  %v519_v9 = vld [vmem:[%s1476_s3 + $0xe8] sm:$0xff]  ;;  %v502_v12 = vld [vmem:[%s1476_s3 + $0x60] sm:$0xff]  ;;  %v533_v14 = vld [vmem:[%s1476_s3 + $0x158] sm:$0xff] }
  0x23   : > { %1012 = vmatpush3.bf16.msra.mxu1 %v1009_v8  ;;  %v518_v8 = vld [vmem:[%s1476_s3 + $0xe0] sm:$0xff]  ;;  %v503_v13 = vld [vmem:[%s1476_s3 + $0x68] sm:$0xff]  ;;  %v1069_v16 = vpack.c.bf16 %v533_v14, %v532_v10  ;;  %v505_v22 = vld [vmem:[%s1476_s3 + $0x78] sm:$0xff] }
  0x24   : > { %1014 = vmatprep.subr.bf16.mxu1 %v1013_v17  ;;  %v1041_v11 = vpack.c.bf16 %v519_v9, %v518_v8  ;;  %v1043_v15 = vpack.c.bf16 %v503_v13, %v502_v12  ;;  %v534_v19 = vld [vmem:[%s1476_s3 + $0x160] sm:$0xff]  ;;  %v535_v23 = vld [vmem:[%s1476_s3 + $0x168] sm:$0xff] }
  0x25   : > { %984 = vmatpush3.bf16.msra.mxu0 %v983_v18  ;;  %v521_v18 = vld [vmem:[%s1476_s3 + $0xf8] sm:$0xff]  ;;  %v1073_v25 = vpack.c.bf16 %v535_v23, %v534_v19  ;;  %v766_v56 = vld [vmem:[%s1477_s4] ss:$0 sm:$0xff] }
  0x26   : > { %1018 = vmatprep.subr.bf16.mxu0 %v1017_v21  ;;  %v504_v21 = vld [vmem:[%s1476_s3 + $0x70] sm:$0xff] }
  0x27   : > { %1016 = vmatpush3.bf16.msra.mxu1 %v1013_v17  ;;  %v520_v17 = vld [vmem:[%s1476_s3 + $0xf0] sm:$0xff]  ;;  %v1047_v24 = vpack.c.bf16 %v505_v22, %v504_v21 }
  0x28   : > { %375 = vmatmul.mubr.f32.vlgmr.msra.gmra.mrb[0].mxu0 %v249_v27  ;;  %1050 = vmatprep.subr.bf16.mxu1 %v1049_v26  ;;  %v1045_v20 = vpack.c.bf16 %v521_v18, %v520_v17  ;;  %v537_v27 = vld [vmem:[%s1476_s3 + $0x178] sm:$0xff] }
  0x29   : > { %379 = vmatprep.mubr.f32.mxu0 %v1261_v52  ;;  %1020 = vmatpush3.bf16.msra.mxu0 %v1019_v28 }
  0x2a   : > { %916 = vmatmul.mubr.f32.vlgmr.msra.gmra.mrb[0].mxu1 %v254_v34  ;;  %1022 = vmatprep.subr.bf16.mxu0 %v1021_v31  ;;  %v765_v31 = vld [vmem:[%s1475_s2] ss:$0 sm:$0xff] }
  0x2b   : > { %1052 = vmatpush3.bf16.msra.mxu1 %v1049_v26  ;;  %v536_v26 = vld [vmem:[%s1476_s3 + $0x170] sm:$0xff] }
  0x2c   : > { %380 = vmatmul.mubr.f32.gmra.mrb[2].mxu0 %v1279_v63  ;;  %1054 = vmatprep.subr.bf16.mxu1 %v1053_v37  ;;  %v516_v63 = vld [vmem:[%s1476_s3 + $0xd0] sm:$0xff]  ;;  %v1077_v28 = vpack.c.bf16 %v537_v27, %v536_v26 }
  0x2d   : > { %1024 = vmatpush3.bf16.msra.mxu0 %v1023_v38  ;;  %v1037_v2 = vpack.c.bf16 %v517_v0, %v516_v63 }
  0x2e   : > { %1026 = vmatprep.subr.bf16.mxu0 %v1025_v39 }
  0x2f   : > { %1056 = vmatpush3.bf16.msra.mxu1 %v1053_v37 }
  0x30   : > { %1058 = vmatprep.subr.bf16.mxu1 %v1057_v53 }
  0x31   : > { %1028 = vmatpush3.bf16.msra.mxu0 %v1027_v42 }
  0x32   : > { %1030 = vmatprep.subr.bf16.mxu0 %v1029_v46 }
  0x33   : > { %1060 = vmatpush3.bf16.msra.mxu1 %v1057_v53 }
  0x34   : > { %1062 = vmatprep.subr.bf16.mxu1 %v1061_v62 }
  0x35   : > { %1032 = vmatpush3.bf16.msra.mxu0 %v1031_v51 }
  0x36   : > { %1034 = vmatprep.subr.bf16.mxu0 %v1033_v57 }
  0x37   : > { %1064 = vmatpush3.bf16.msra.mxu1 %v1061_v62 }
  0x38   : > { %1066 = vmatprep.subr.bf16.mxu1 %v1065_v7 }
  0x39   : > { %1036 = vmatpush3.bf16.msra.mxu0 %v1035_v61 }
  0x3a   : > { %1038 = vmatprep.subr.bf16.mxu0 %v1037_v2 }
  0x3b   : > { %1068 = vmatpush3.bf16.msra.mxu1 %v1065_v7 }
  0x3c   : > { %1070 = vmatprep.subr.bf16.mxu1 %v1069_v16 }
  0x3d   : > { %1040 = vmatpush3.bf16.msra.mxu0 %v1039_v6 }
  0x3e   : > { %1042 = vmatprep.subr.bf16.mxu0 %v1041_v11 }
  0x3f   : > { %1072 = vmatpush3.bf16.msra.mxu1 %v1069_v16 }
  0x40   : > { %1074 = vmatprep.subr.bf16.mxu1 %v1073_v25 }
  0x41   : > { %1044 = vmatpush3.bf16.msra.mxu0 %v1043_v15 }
  0x42   : > { %1046 = vmatprep.subr.bf16.mxu0 %v1045_v20 }
  0x43   : > { %1076 = vmatpush3.bf16.msra.mxu1 %v1073_v25 }
  0x44   : > { %1078 = vmatprep.subr.bf16.mxu1 %v1077_v28 }
  0x45   : > { %1048 = vmatpush3.bf16.msra.mxu0 %v1047_v24 }
  0x47   : > { %1080 = vmatpush3.bf16.msra.mxu1 %v1077_v28 }
  0xfb   : > { %v803_v29 = vpop.f32.mrb[0].mxu0 }
  0xfc   : > { %v804_v30 = vpop.f32.mrb[1].mxu0 }
  0xfd   : > { %v805_v32 = vadd.f32 %v804_v30, %v803_v29  ;;  %v917_v33 = vpop.f32.mrb[0].mxu1 }
  0xfe   : > { %v451_v34 = vpop.f32.mrb[1].mxu1 }
  0xff   : > { %v806_v35 = vpop.f32.mrb[2].mxu0  ;;  %v377_v36 = vadd.f32 %v805_v32, %v765_v31 }
 0x100   : > { %v807_v37 = vpop.f32.mrb[3].mxu0 }
 0x101   : > { %v808_v38 = vadd.f32 %v807_v37, %v806_v35  ;;  %v452_v39 = vadd.f32 %v451_v34, %v377_v36 }
 0x103   : > { %v382_v40 = vadd.f32 %v808_v38, %v765_v31  ;;  %v460_v41 = vmax.f32 %v452_v39, 0.0 }
 0x105   : > { %v457_v42 = vadd.f32 %v917_v33, %v382_v40  ;;  %v466_v43 = vrot.slane %v460_v41, 6  ;;  %609 = vmatprep.mubr.f32.mxu0 %v460_v41  ;;  %v476_v48 = vrot.slane %v460_v41, 2 }
 0x107   : > { %v461_v44 = vmax.f32 %v457_v42, 0.0  ;;  %471 = vst [vmem:[#allocation3] sm:$0xfc] %v466_v43 }
 0x109   : > { %v467_v45 = vrot.slane %v461_v44, 6  ;;  %v477_v46 = vrot.slane %v461_v44, 2 }
 0x10b   : > { %482 = vst [vmem:[#allocation3 + $0x28] sm:$0x3f] %v477_v46  ;;  %v468_v49 = vsel %vm465_vm2, %v466_v43, %v467_v45  ;;  %v478_v50 = vsel %vm475_vm3, %v476_v48, %v477_v46 }
 0x10c   : > { %950 = vmatprep.mubr.f32.mxu1 %v478_v50 }
 0x10e   : > { %v484_v51 = vld [vmem:[#allocation3] sm:$0xff] }
 0x10f   : > { %610 = vmatmul.mubr.f32.vlgmr.msra.gmra.mrb[4].mxu0 %v484_v51 }
 0x110   : > { %614 = vmatprep.mubr.f32.mxu0 %v461_v44 }
 0x112   : > { %v489_v53 = vld [vmem:[#allocation3 + $0x28] sm:$0xff] }
 0x113   : > { %615 = vmatmul.mubr.f32.gmra.mrb[6].mxu0 %v468_v49  ;;  %951 = vmatmul.mubr.f32.vlgmr.msra.gmra.mrb[2].mxu1 %v489_v53 }
 0x1e2   : > { %v859_v54 = vpop.f32.mrb[4].mxu0 }
 0x1e3   : > { %v860_v55 = vpop.f32.mrb[5].mxu0 }
 0x1e4   : > { %v861_v57 = vadd.f32 %v860_v55, %v859_v54 }
 0x1e6   : > { %v862_v58 = vpop.f32.mrb[6].mxu0  ;;  %v952_v59 = vpop.f32.mrb[2].mxu1  ;;  %v612_v60 = vadd.f32 %v861_v57, %v766_v56 }
 0x1e7   : > { %v863_v61 = vpop.f32.mrb[7].mxu0  ;;  %v686_v62 = vpop.f32.mrb[3].mxu1 }
 0x1e8   : > { %v864_v63 = vadd.f32 %v863_v61, %v862_v58  ;;  %v687_v0 = vadd.f32 %v686_v62, %v612_v60 }
 0x1ea   : > { %v617_v1 = vadd.f32 %v864_v63, %v766_v56  ;;  %v695_v2 = vadd.f32 %v687_v0, %v1251_v47 }
 0x1ec   : > { %v692_v3 = vadd.f32 %v952_v59, %v617_v1  ;;  %v697_v4 = vmax.f32 %v695_v2, 0.0 }
 0x1ee   : > { %v696_v5 = vadd.f32 %v692_v3, %v1261_v52  ;;  %699 = vst [vmem:[%s224_s22] sm:$0xff] %v697_v4 }
 0x1f0   : > { %v698_v6 = vmax.f32 %v696_v5, 0.0 }
 0x1f2   : > { %700 = vst [vmem:[%s224_s22 + $0x8] sm:$0xff] %v698_v6 }
 0x1f3 PF: > { %s15_s18 = sadd.s32 1, %s1096_s18  }
 0x1f4   : > { %p12_p4 = scmp.ge.s32.totalorder %s15_s18, 4  }
 0x1f6   :  { %14 = sbr.rel (!%p12_p4) target bundleno = 1 (0x1), region = 70 }

</bundles_post_ra>
